<compile_context>
chip_gen: v7x
topology: tpu7x:2x2x1
jax: 0.10.0
libtpu: 0.0.40
codegen_flags: <defaults>
</compile_context>

<pallas_src>
import jax
import jax.numpy as jnp
from jax import lax
from jax.experimental import pallas as pl
from jax.experimental.pallas import tpu as pltpu


# ----------------------------- configuration --------------------------------
class Config:
    batch_size = 2
    image_channel = 1          # must be 1 for the reference module's forward to be valid
    image_size = 16
    patch_size = 4
    image_embedding = 32


# ------------------------------ Pallas kernel --------------------------------
def image_embedding_kernel(patches_ref, w_ref, slab_ref, o_ref):
    """Single-invocation kernel (no grid).

    patches_ref : (B*(N+1), K)    f32  flattened patches; row b*(N+1) is a zero "class slot" row
    w_ref       : (K, Epad)       f32  conv weight flattened as (C*P*P, E), zero-padded to Epad lanes
    slab_ref    : (B*(N+1), Epad) f32  additive slab: class rows = cls+pos[0], patch rows = pos+bias
    o_ref       : (B*(N+1), Epad) f32  output (lane-dense); wrapper slices back to E
    """
    # One MXU matmul (f32 accumulation) + one VPU add + one unmasked full-slab store.
    o_ref[...] = (
        jnp.dot(patches_ref[...], w_ref[...], preferred_element_type=jnp.float32)
        + slab_ref[...]
    )


# ------------------------------ wrapper --------------------------------------
def image_embedding(x, conv_w, conv_b, cls_token, pos_embd, cfg: Config):
    B, C, H, W = x.shape
    P = cfg.patch_size
    E = cfg.image_embedding
    Hp, Wp = H // P, W // P
    N = Hp * Wp
    K = C * P * P
    R = N + 1                                   # rows per batch (class slot + patches)
    Epad = ((E + 127) // 128) * 128             # lane-dense output width (128 here)

    assert C == 1, (
        "ImageEmbedding forward (like the PyTorch original) is only shape-consistent "
        "for image_channel == 1")

    # Patch extraction (layout plumbing, plain JAX; negligible at this toy size):
    # (B, C, Hp, P, Wp, P) -> (B, Hp, Wp, C, P, P) -> (B, N, C*P*P)
    patches = (x.reshape(B, C, Hp, P, Wp, P)
                .transpose(0, 2, 4, 1, 3, 5)
                .reshape(B, N, K))
    # Prepend one zero "dummy class-slot" row per batch -> (B*(N+1), K).
    patches = jnp.pad(patches, ((0, 0), (1, 0), (0, 0))).reshape(B * R, K)

    # Conv weight (E, C, P, P) -> (K, E) matching the (c, ph, pw) patch ordering,
    # zero-padded along the output dim to Epad lanes.
    # (For real configs: store the weight pre-transposed / pre-padded instead of per call.)
    w_flat = jnp.pad(conv_w.reshape(E, K).T, ((0, 0), (0, Epad - E)))          # (K, Epad)

    # Additive slab: row 0 of each batch = cls_token + pos[0]; rows 1..N = pos[1:] + conv bias.
    pos = pos_embd.reshape(R, E)
    slab = jnp.concatenate(
        [cls_token.reshape(1, E) + pos[0:1],                                    # class row
         pos[1:] + conv_b.reshape(1, E)],                                       # patch rows
        axis=0)                                                                 # (N+1, E)
    slab = jnp.pad(jnp.tile(slab, (B, 1)), ((0, 0), (0, Epad - E)))             # (B*(N+1), Epad)

    vmem = lambda: pl.BlockSpec(memory_space=pltpu.MemorySpace.VMEM)
    out2d = pl.pallas_call(
        image_embedding_kernel,
        out_shape=jax.ShapeDtypeStruct((B * R, Epad), jnp.float32),
        in_specs=[vmem(), vmem(), vmem()],
        out_specs=vmem(),
    )(patches, w_flat, slab)

    # Drop the lane padding and restore (B, N+1, E).
    return out2d[:, :E].reshape(B, R, E)


# ------------------------------ reference ------------------------------------
def image_embedding_ref(x, conv_w, conv_b, cls_token, pos_embd, cfg: Config):
    P = cfg.patch_size
    y = lax.conv_general_dilated(
        x, conv_w, window_strides=(P, P), padding="VALID",
        dimension_numbers=("NCHW", "OIHW", "NCHW"))
    y = y + conv_b.reshape(1, -1, 1, 1)                  # (B, E, Hp, Wp)
    B, E, Hp, Wp = y.shape
    y = y.reshape(B, E, Hp * Wp).transpose(0, 2, 1)      # (B, N, E)
    cls = jnp.broadcast_to(cls_token, (B,) + cls_token.shape[1:])
    y = jnp.concatenate([cls, y], axis=1)                # (B, N+1, E)
    return pos_embd + y


# ------------------------------ main ------------------------------------------
if __name__ == "__main__":
    cfg = Config()
    B, C, S, P, E = (cfg.batch_size, cfg.image_channel, cfg.image_size,
                     cfg.patch_size, cfg.image_embedding)
    N = (S // P) ** 2

    key = jax.random.PRNGKey(0)
    kx, kw, kb, kc, kp = jax.random.split(key, 5)

    x = jax.random.normal(kx, (B, C, S, S), dtype=jnp.float32)
    conv_w = jax.random.normal(kw, (E, C, P, P), dtype=jnp.float32) * 0.05
    conv_b = jax.random.normal(kb, (E,), dtype=jnp.float32) * 0.05
    cls_token = jax.random.normal(kc, (1, C, E), dtype=jnp.float32)
    pos_embd = jax.random.normal(kp, (1, N + 1, E), dtype=jnp.float32)

    out = image_embedding(x, conv_w, conv_b, cls_token, pos_embd, cfg)
    out = jax.block_until_ready(out)

    ref = image_embedding_ref(x, conv_w, conv_b, cls_token, pos_embd, cfg)
    assert out.shape == (B, N + 1, E), out.shape
    assert jnp.allclose(out, ref, atol=1e-4, rtol=1e-4), "mismatch vs reference"

    print("KERNEL_OK")
</pallas_src>

<mosaic_0001>
module attributes {stable_mosaic.version = 11 : i64} {
  func.func @image_embedding_kernel(%arg0: memref<34x16xf32, #tpu.memory_space<vmem>>, %arg1: memref<16x128xf32, #tpu.memory_space<vmem>>, %arg2: memref<34x128xf32, #tpu.memory_space<vmem>>, %arg3: memref<34x128xf32, #tpu.memory_space<vmem>>) attributes {dimension_semantics = [], scalar_prefetch = 0 : i64, scratch_operands = 0 : i64, tpu.core_type = #tpu.core_type<tc>} {
    %c0 = arith.constant 0 : index
    %c0_0 = arith.constant 0 : index
    %0 = vector.load %arg0[%c0, %c0_0] : memref<34x16xf32, #tpu.memory_space<vmem>>, vector<34x16xf32>
    %c0_1 = arith.constant 0 : index
    %c0_2 = arith.constant 0 : index
    %1 = vector.load %arg1[%c0_1, %c0_2] : memref<16x128xf32, #tpu.memory_space<vmem>>, vector<16x128xf32>
    %cst = arith.constant dense<0.000000e+00> : vector<34x128xf32>
    %2 = tpu.matmul %0, %1, %cst {dimension_numbers = #tpu.dot_dimension_numbers<[1], [0], [0], [1], [0, 0, 1, 1], [], []>} : vector<34x16xf32>, vector<16x128xf32>, vector<34x128xf32> -> vector<34x128xf32>
    %c0_3 = arith.constant 0 : index
    %c0_4 = arith.constant 0 : index
    %3 = vector.load %arg2[%c0_3, %c0_4] : memref<34x128xf32, #tpu.memory_space<vmem>>, vector<34x128xf32>
    %4 = arith.addf %2, %3 : vector<34x128xf32>
    %c0_5 = arith.constant 0 : index
    %c0_6 = arith.constant 0 : index
    %5 = vector.load %arg3[%c0_5, %c0_6] : memref<34x128xf32, #tpu.memory_space<vmem>>, vector<34x128xf32>
    tpu.vector_store %arg3[%c0_5, %c0_6], %4 {strides = array<i32>} : memref<34x128xf32, #tpu.memory_space<vmem>>, vector<34x128xf32>,
    return
  }
}

</mosaic_0001>

<bundles_post_ra>
// kernel: tpu_custom_call.1
= control target key start
LH: loop header
LB: loop body
LE: loop exit
PB: predicated region body
PF: predicated region fallthrough
CT: control target
= control target key end

     0   :  { %v220_v2 = vmov 0.0|0.0   ;;  %vm221_vm0 = vmmov 0   ;;  %v222_v4 = vmov 0.0   ;;  %s299_s0 = inlined_call_operand.vmem [shape: f32[34,16], index: 0, kind: input, shape index: {}]   ;;  %s300_s1 = inlined_call_operand.vmem [shape: f32[16,128], index: 1, kind: input, shape index: {}]   ;;  %s301_s2 = inlined_call_operand.vmem [shape: f32[34,128], index: 2, kind: input, shape index: {}]   ;;  %s302_s3 = inlined_call_operand.hbm [shape: f32[34,128], index: 3, kind: output, shape index: {}]  }
   0x1   :  { %v20_v0 = vld [vmem:[%s300_s1] sm:$0xff]  ;;  %v21_v1 = vld [vmem:[%s300_s1 + $0x8] sm:$0xff]  ;;  %185 = vmatprep.subr.bf16.mxu0 %v220_v2  ;;  %188 = vmatprep.subr.bf16.mxu1 %v220_v2 }
   0x2   :  { %v186_v3 = vpack.c.bf16 %v21_v1, %v20_v0  ;;  %170 = vmatprep.mubr.msk.f32.mxu0 %vm221_vm0, %v222_v4  ;;  %179 = vmatprep.mubr.msk.f32.mxu1 %vm221_vm0, %v222_v4 }
   0x3   :  { %8 = vsyncpa [#allocation3], 0  ;;  %v15_v5 = vld [vmem:[%s299_s0] sm:$0xff]  ;;  %vm27_vm1 = vcmask 130048   ;;  %v18_v6 = vld [vmem:[%s299_s0 + $0x18] sm:$0xff]  ;;  %s223_s5 = smov [#allocation2]  }
   0x4   :  { %187 = vmatpush3.bf16.msra.mxu0 %v186_v3  ;;  %189 = vmatpush3.bf16.msra.mxu1 %v186_v3  ;;  %v16_v7 = vld [vmem:[%s299_s0 + $0x8] sm:$0xff]  ;;  %v19_v8 = vld [vmem:[%s299_s0 + $0x20] sm:$0x3]  ;;  %v17_v9 = vld [vmem:[%s299_s0 + $0x10] sm:$0xff]  ;;  %s143_s6 = sshll.u32 %s223_s5, 4  ;;  %s144_s6 = int_to_ptr.vmem [resolvable:$true] %s143_s6 }
   0x5   :  { %v22_v10 = vld [vmem:[%s301_s2] sm:$0xff]  ;;  %v25_v11 = vld [vmem:[%s301_s2 + $0x18] sm:$0xff]  ;;  %v23_v18 = vld [vmem:[%s301_s2 + $0x8] sm:$0xff]  ;;  %s196_s9 = scalar_lea.vmem %s144_s6, 640  ;;  %p201_p1 = scmp.lt.s32.totalorder %s144_s6, %s144_s6 }
   0x6   :  { %v26_v19 = vld [vmem:[%s301_s2 + $0x20] sm:$0x3]  ;;  %v24_v26 = vld [vmem:[%s301_s2 + $0x10] sm:$0xff]  ;;  %p197_p0 = scmp.ne.s32.totalorder %s144_s6, %s196_s9  ;;  %p202_p2 = scmp.lt.s32.totalorder %s196_s9, %s196_s9 }
   0x7   :  { %171 = vmatmul.mubr.msk.f32.vlgmr.msra.gmra.mrb[0].mxu0 %vm27_vm1, %v15_v5  ;;  %180 = vmatmul.mubr.msk.f32.vlgmr.msra.gmra.mrb[0].mxu1 %vm27_vm1, %v18_v6 }
   0x8   :  { %173 = vmatprep.mubr.msk.f32.mxu0 %vm221_vm0, %v222_v4  ;;  %182 = vmatprep.mubr.msk.f32.mxu1 %vm221_vm0, %v222_v4  ;;  %p203_p3 = por %p202_p2, %p201_p1 }
   0xa   :  { %p204_p4 = pnand %p203_p3, %p197_p0 }
   0xb   :  { %174 = vmatmul.mubr.msk.f32.gmra.mrb[2].mxu0 %vm27_vm1, %v16_v7  ;;  %183 = vmatmul.mubr.msk.f32.gmra.mrb[2].mxu1 %vm27_vm1, %v19_v8 }
   0xc   :  { %176 = vmatprep.mubr.msk.f32.mxu0 %vm221_vm0, %v222_v4 }
   0xf   :  { %177 = vmatmul.mubr.msk.f32.gmra.mrb[4].mxu0 %vm27_vm1, %v17_v9 }
  0xda   :  { %v109_v12 = vpop.f32.mrb[0].mxu0  ;;  %v124_v13 = vpop.f32.mrb[0].mxu1 }
  0xdb   :  { %v110_v14 = vadd.f32 %v109_v12, %v22_v10  ;;  %v172_v15 = vpop.f32.mrb[1].mxu0  ;;  %v125_v16 = vadd.f32 %v124_v13, %v25_v11  ;;  %v181_v17 = vpop.f32.mrb[1].mxu1 }
  0xdd   :  { %133 = vst [vmem:[#allocation2] sm:$0xff] %v110_v14  ;;  %136 = vst [vmem:[#allocation2 + $0x18] sm:$0xff] %v125_v16 }
  0xde   :  { %v114_v20 = vpop.f32.mrb[2].mxu0  ;;  %v129_v21 = vpop.f32.mrb[2].mxu1 }
  0xdf   :  { %v115_v22 = vadd.f32 %v114_v20, %v23_v18  ;;  %v175_v23 = vpop.f32.mrb[3].mxu0  ;;  %v130_v24 = vadd.f32 %v129_v21, %v26_v19  ;;  %v184_v25 = vpop.f32.mrb[3].mxu1 }
  0xe1   :  { %134 = vst [vmem:[#allocation2 + $0x8] sm:$0xff] %v115_v22  ;;  %137 = vst [vmem:[#allocation2 + $0x20] sm:$0x3] %v130_v24 }
  0xe2   :  { %v119_v27 = vpop.f32.mrb[4].mxu0 }
  0xe3   :  { %v120_v28 = vadd.f32 %v119_v27, %v24_v26  ;;  %v178_v29 = vpop.f32.mrb[5].mxu0 }
  0xe5   :  { %135 = vst [vmem:[#allocation2 + $0x10] sm:$0xff] %v120_v28 }
  0xe6   :  { %207 = shalt.err (!%p204_p4)
}
  0xe7   :  { %s208_s12 = scalar_lea.hbm %s302_s3, 640 }
  0xe8   :  { %p209_p5 = scmp.ne.s32.totalorder %s302_s3, %s208_s12  ;;  %p212_p6 = scmp.lt.u32.totalorder %s208_s12, %s302_s3 }
  0xea   :  { %p214_p7 = pnand %p212_p6, %p209_p5 }
  0xec   :  { %217 = shalt.err (!%p214_p7)
}
  0xed   :  { %s224_s16 = smov 128   ;;  %s225_s17 = smov 8  }
  0xee   :  { %149 = dma.vmem_to_hbm [thread:$0]  %s144_s6, 640, %s302_s3, [#allocation3], %s224_s16, %s224_s16, %s225_s17  }
  0xef   :  { %218 = dma.done.wait [#allocation3], 640  }
  0xf0   :  { %219 = vsyncadd [#allocation3], 4294966656 }
  0xf1   :  { %153 = vsyncpa [#allocation3], 1 }

</bundles_post_ra>
